<compile_context>
chip_gen: v7x
topology: tpu7x:2x2x1
jax: 0.10.0
libtpu: 0.0.40
codegen_flags: <defaults>
</compile_context>

<pallas_src>
import jax
import jax.numpy as jnp
from jax.experimental import pallas as pl
from jax.experimental.pallas import tpu as pltpu

K = 5               # conv kernel size
L_IN = 30           # input length
L1 = L_IN - K + 1   # 26 = conv1 output length
L2 = L1 - K + 1     # 22 = conv2 output length
C1 = 128
C2 = 256
N_OUT = 3
OUT_PAD = 128       # lane-dense padded output width


# ---------------------------------------------------------------------------
# Fused kernel: conv1 + relu + conv2 + relu + fc + sigmoid
# ---------------------------------------------------------------------------
def _net_kernel(x_ref, w1_ref, b1_ref, w2_ref, b2_ref, wfc_ref, bfc_ref, out_ref):
    """Fused forward pass.

    x_ref  : (30, 1)      f32   input as a time-major column vector
    w1_ref : (5, 128)     f32   conv1 weight  [k, cout]
    b1_ref : (1, 128)     f32
    w2_ref : (640, 256)   bf16  conv2 weight  [k*128 + cin, cout]
    b2_ref : (1, 256)     f32
    wfc_ref: (3, 22, 256) f32   FC weight     [n, time, channel]
    bfc_ref: (1, 128)     f32   FC bias in lanes 0..2, zeros elsewhere
    out_ref: (1, 128)     f32   sigmoid(logits) in lanes 0..2
    """
    x = x_ref[...]                                      # (30, 1)
    w1 = w1_ref[...]                                    # (5, 128)

    # ---- conv1 + ReLU on the VPU: h1[t, c] = sum_k x[t+k] * w1[k, c] -------
    acc1 = x[0:L1, :] * w1[0:1, :]                      # (26,1)*(1,128) -> (26,128)
    for k in range(1, K):
        acc1 = acc1 + x[k:k + L1, :] * w1[k:k + 1, :]
    h1 = jnp.maximum(acc1 + b1_ref[...], 0.0)           # (26, 128) f32

    # ---- conv2 + ReLU: one lane-aligned bf16 MXU matmul ---------------------
    # in-kernel im2col: h1_col[t, k*128 + c] = h1[t+k, c]
    h1_b = h1.astype(jnp.bfloat16)                      # cast once, before concat
    h1_col = jnp.concatenate([h1_b[k:k + L2, :] for k in range(K)], axis=1)  # (22, 640)
    h2 = jnp.dot(h1_col, w2_ref[...],
                 preferred_element_type=jnp.float32)    # (22, 256) f32 accumulate
    h2 = jnp.maximum(h2 + b2_ref[...], 0.0)

    # ---- Linear(5632, 3) + sigmoid on the VPU/XLU (MXU-hostile shape) -------
    lane = jax.lax.broadcasted_iota(jnp.int32, (1, OUT_PAD), 1)
    logits = bfc_ref[...]                               # (1, 128), bias in lanes 0..2
    for n in range(N_OUT):
        prod = h2 * wfc_ref[n]                          # (22, 256) VPU
        # sublane reduce first (22 -> 1), then a single lane reduce (256 -> 1)
        y = jnp.sum(jnp.sum(prod, axis=0, keepdims=True),
                    axis=1, keepdims=True)              # (1, 1)
        logits = logits + jnp.where(lane == n, y, 0.0)
    out_ref[...] = jax.nn.sigmoid(logits)               # unused lanes -> 0.5 (sliced off)


# ---------------------------------------------------------------------------
# One-time parameter re-layout (hoisted out of the forward pass)
# ---------------------------------------------------------------------------
def prepare_params(params):
    W1, b1, W2, b2, Wfc, bfc = params
    w1 = jnp.transpose(W1, (2, 1, 0)).reshape(K, C1)                      # (5, 128)
    b1k = b1.reshape(1, C1)
    w2 = jnp.transpose(W2, (2, 1, 0)).reshape(K * C1, C2).astype(jnp.bfloat16)  # (640, 256)
    b2k = b2.reshape(1, C2)
    # PyTorch flatten order is (channel, time); kernel activations are (time, channel).
    wfc = Wfc.reshape(N_OUT, C2, L2).transpose(0, 2, 1)                   # (3, 22, 256)
    bfck = jnp.zeros((1, OUT_PAD), jnp.float32).at[0, :N_OUT].set(bfc)
    return (w1, b1k, w2, b2k, wfc, bfck)


# ---------------------------------------------------------------------------
# Forward wrapper: single pallas_call, whole arrays resident in VMEM
# ---------------------------------------------------------------------------
def net_forward(x, kernel_params):
    """x: (1, 1, 30) float32 (NCL, as in PyTorch). Returns (1, 3)."""
    w1, b1k, w2, b2k, wfc, bfck = kernel_params
    x_col = x.reshape(L_IN, 1).astype(jnp.float32)       # time-major column

    vmem = pl.BlockSpec(memory_space=pltpu.MemorySpace.VMEM)
    out_padded = pl.pallas_call(
        _net_kernel,
        out_shape=jax.ShapeDtypeStruct((1, OUT_PAD), jnp.float32),
        in_specs=[vmem] * 7,
        out_specs=vmem,
        cost_estimate=pl.CostEstimate(
            flops=2 * (L1 * C1 * K + L2 * C2 * C1 * K + N_OUT * C2 * L2),
            transcendentals=OUT_PAD,
            bytes_accessed=4 * (L_IN + K * C1 + C1 + C2
                                + N_OUT * L2 * C2 + OUT_PAD + OUT_PAD)
                           + 2 * (K * C1 * C2),
        ),
    )(x_col, w1, b1k, w2, b2k, wfc, bfck)
    return out_padded[:, :N_OUT]


# ---------------------------------------------------------------------------
# Deterministic parameter init (PyTorch-style uniform(-1/sqrt(fan_in), ...))
# ---------------------------------------------------------------------------
def init_params(key):
    ks = jax.random.split(key, 6)

    def u(k, shape, fan_in):
        bound = 1.0 / jnp.sqrt(float(fan_in))
        return jax.random.uniform(k, shape, jnp.float32, -bound, bound)

    W1 = u(ks[0], (C1, 1, K), 1 * K)            # Conv1d(1, 128, 5).weight
    b1 = u(ks[1], (C1,), 1 * K)
    W2 = u(ks[2], (C2, C1, K), C1 * K)          # Conv1d(128, 256, 5).weight
    b2 = u(ks[3], (C2,), C1 * K)
    Wfc = u(ks[4], (N_OUT, C2 * L2), C2 * L2)   # Linear(5632, 3).weight
    bfc = u(ks[5], (N_OUT,), C2 * L2)
    return (W1, b1, W2, b2, Wfc, bfc)


# ---------------------------------------------------------------------------
# Pure-JAX reference (sanity check only)
# ---------------------------------------------------------------------------
def net_reference(x, params):
    W1, b1, W2, b2, Wfc, bfc = params
    dn = ("NCH", "OIH", "NCH")
    h = jax.lax.conv_general_dilated(x, W1, (1,), "VALID", dimension_numbers=dn)
    h = jax.nn.relu(h + b1[None, :, None])
    h = jax.lax.conv_general_dilated(h, W2, (1,), "VALID", dimension_numbers=dn)
    h = jax.nn.relu(h + b2[None, :, None])
    h = h.reshape(-1, C2 * L2)
    return jax.nn.sigmoid(h @ Wfc.T + bfc)


if __name__ == "__main__":
    key = jax.random.PRNGKey(0)
    kx, kp = jax.random.split(key)

    # mirrors ob = np.random.rand(1, 1, 30)
    x = jax.random.uniform(kx, (1, 1, L_IN), jnp.float32)
    params = init_params(kp)
    kernel_params = prepare_params(params)   # one-time weight re-layout

    fwd = jax.jit(net_forward)
    out = jax.block_until_ready(fwd(x, kernel_params))

    ref = jax.block_until_ready(net_reference(x, params))
    assert out.shape == (1, N_OUT)
    assert jnp.allclose(out, ref, atol=2e-2, rtol=2e-2), (out, ref)

    print("KERNEL_OK")
</pallas_src>

<mosaic_0001>
module attributes {stable_mosaic.version = 11 : i64} {
  func.func @_net_kernel(%arg0: memref<30x1xf32, #tpu.memory_space<vmem>>, %arg1: memref<5x128xf32, #tpu.memory_space<vmem>>, %arg2: memref<1x128xf32, #tpu.memory_space<vmem>>, %arg3: memref<640x256xbf16, #tpu.memory_space<vmem>>, %arg4: memref<1x256xf32, #tpu.memory_space<vmem>>, %arg5: memref<3x22x256xf32, #tpu.memory_space<vmem>>, %arg6: memref<1x128xf32, #tpu.memory_space<vmem>>, %arg7: memref<1x128xf32, #tpu.memory_space<vmem>>) attributes {dimension_semantics = [], scalar_prefetch = 0 : i64, scratch_operands = 0 : i64, tpu.core_type = #tpu.core_type<tc>} {
    %c0 = arith.constant 0 : index
    %c0_0 = arith.constant 0 : index
    %0 = vector.load %arg0[%c0, %c0_0] : memref<30x1xf32, #tpu.memory_space<vmem>>, vector<30x1xf32>
    %c0_1 = arith.constant 0 : index
    %c0_2 = arith.constant 0 : index
    %1 = vector.load %arg1[%c0_1, %c0_2] : memref<5x128xf32, #tpu.memory_space<vmem>>, vector<5x128xf32>
    %2 = vector.extract_strided_slice %0 {offsets = [0, 0], sizes = [26, 1], strides = [1, 1]} : vector<30x1xf32> to vector<26x1xf32>
    %3 = vector.extract_strided_slice %1 {offsets = [0, 0], sizes = [1, 128], strides = [1, 1]} : vector<5x128xf32> to vector<1x128xf32>
    %4 = vector.broadcast %2 : vector<26x1xf32> to vector<26x128xf32>
    %5 = vector.broadcast %3 : vector<1x128xf32> to vector<26x128xf32>
    %6 = arith.mulf %4, %5 : vector<26x128xf32>
    %7 = vector.extract_strided_slice %0 {offsets = [1, 0], sizes = [26, 1], strides = [1, 1]} : vector<30x1xf32> to vector<26x1xf32>
    %8 = vector.extract_strided_slice %1 {offsets = [1, 0], sizes = [1, 128], strides = [1, 1]} : vector<5x128xf32> to vector<1x128xf32>
    %9 = vector.broadcast %7 : vector<26x1xf32> to vector<26x128xf32>
    %10 = vector.broadcast %8 : vector<1x128xf32> to vector<26x128xf32>
    %11 = arith.mulf %9, %10 : vector<26x128xf32>
    %12 = arith.addf %6, %11 : vector<26x128xf32>
    %13 = vector.extract_strided_slice %0 {offsets = [2, 0], sizes = [26, 1], strides = [1, 1]} : vector<30x1xf32> to vector<26x1xf32>
    %14 = vector.extract_strided_slice %1 {offsets = [2, 0], sizes = [1, 128], strides = [1, 1]} : vector<5x128xf32> to vector<1x128xf32>
    %15 = vector.broadcast %13 : vector<26x1xf32> to vector<26x128xf32>
    %16 = vector.broadcast %14 : vector<1x128xf32> to vector<26x128xf32>
    %17 = arith.mulf %15, %16 : vector<26x128xf32>
    %18 = arith.addf %12, %17 : vector<26x128xf32>
    %19 = vector.extract_strided_slice %0 {offsets = [3, 0], sizes = [26, 1], strides = [1, 1]} : vector<30x1xf32> to vector<26x1xf32>
    %20 = vector.extract_strided_slice %1 {offsets = [3, 0], sizes = [1, 128], strides = [1, 1]} : vector<5x128xf32> to vector<1x128xf32>
    %21 = vector.broadcast %19 : vector<26x1xf32> to vector<26x128xf32>
    %22 = vector.broadcast %20 : vector<1x128xf32> to vector<26x128xf32>
    %23 = arith.mulf %21, %22 : vector<26x128xf32>
    %24 = arith.addf %18, %23 : vector<26x128xf32>
    %25 = vector.extract_strided_slice %0 {offsets = [4, 0], sizes = [26, 1], strides = [1, 1]} : vector<30x1xf32> to vector<26x1xf32>
    %26 = vector.extract_strided_slice %1 {offsets = [4, 0], sizes = [1, 128], strides = [1, 1]} : vector<5x128xf32> to vector<1x128xf32>
    %27 = vector.broadcast %25 : vector<26x1xf32> to vector<26x128xf32>
    %28 = vector.broadcast %26 : vector<1x128xf32> to vector<26x128xf32>
    %29 = arith.mulf %27, %28 : vector<26x128xf32>
    %30 = arith.addf %24, %29 : vector<26x128xf32>
    %c0_3 = arith.constant 0 : index
    %c0_4 = arith.constant 0 : index
    %31 = vector.load %arg2[%c0_3, %c0_4] : memref<1x128xf32, #tpu.memory_space<vmem>>, vector<1x128xf32>
    %32 = vector.broadcast %31 : vector<1x128xf32> to vector<26x128xf32>
    %33 = arith.addf %30, %32 : vector<26x128xf32>
    %cst = arith.constant 0.000000e+00 : f32
    %34 = vector.broadcast %cst : f32 to vector<26x128xf32>
    %35 = arith.maximumf %33, %34 : vector<26x128xf32>
    %36 = arith.truncf %35 : vector<26x128xf32> to vector<26x128xbf16>
    %37 = vector.extract_strided_slice %36 {offsets = [0, 0], sizes = [22, 128], strides = [1, 1]} : vector<26x128xbf16> to vector<22x128xbf16>
    %38 = vector.extract_strided_slice %36 {offsets = [1, 0], sizes = [22, 128], strides = [1, 1]} : vector<26x128xbf16> to vector<22x128xbf16>
    %39 = vector.extract_strided_slice %36 {offsets = [2, 0], sizes = [22, 128], strides = [1, 1]} : vector<26x128xbf16> to vector<22x128xbf16>
    %40 = vector.extract_strided_slice %36 {offsets = [3, 0], sizes = [22, 128], strides = [1, 1]} : vector<26x128xbf16> to vector<22x128xbf16>
    %41 = vector.extract_strided_slice %36 {offsets = [4, 0], sizes = [22, 128], strides = [1, 1]} : vector<26x128xbf16> to vector<22x128xbf16>
    %42 = tpu.concatenate %37, %38, %39, %40, %41 in 1 : vector<22x128xbf16>, vector<22x128xbf16>, vector<22x128xbf16>, vector<22x128xbf16>, vector<22x128xbf16> -> vector<22x640xbf16>
    %c0_5 = arith.constant 0 : index
    %c0_6 = arith.constant 0 : index
    %43 = vector.load %arg3[%c0_5, %c0_6] : memref<640x256xbf16, #tpu.memory_space<vmem>>, vector<640x256xbf16>
    %cst_7 = arith.constant dense<0.000000e+00> : vector<22x256xf32>
    %44 = tpu.matmul %42, %43, %cst_7 {dimension_numbers = #tpu.dot_dimension_numbers<[1], [0], [0], [1], [0, 0, 1, 1], [], []>} : vector<22x640xbf16>, vector<640x256xbf16>, vector<22x256xf32> -> vector<22x256xf32>
    %c0_8 = arith.constant 0 : index
    %c0_9 = arith.constant 0 : index
    %45 = vector.load %arg4[%c0_8, %c0_9] : memref<1x256xf32, #tpu.memory_space<vmem>>, vector<1x256xf32>
    %46 = vector.broadcast %45 : vector<1x256xf32> to vector<22x256xf32>
    %47 = arith.addf %44, %46 : vector<22x256xf32>
    %cst_10 = arith.constant 0.000000e+00 : f32
    %48 = vector.broadcast %cst_10 : f32 to vector<22x256xf32>
    %49 = arith.maximumf %47, %48 : vector<22x256xf32>
    %50 = tpu.iota {dimensions = array<i32: 1>} : vector<1x128xi32>
    %c0_11 = arith.constant 0 : index
    %c0_12 = arith.constant 0 : index
    %51 = vector.load %arg6[%c0_11, %c0_12] : memref<1x128xf32, #tpu.memory_space<vmem>>, vector<1x128xf32>
    %c0_13 = arith.constant 0 : index
    %c0_14 = arith.constant 0 : index
    %c0_15 = arith.constant 0 : index
    %52 = vector.load %arg5[%c0_13, %c0_14, %c0_15] : memref<3x22x256xf32, #tpu.memory_space<vmem>>, vector<1x22x256xf32>
    %53 = vector.shape_cast %52 : vector<1x22x256xf32> to vector<22x256xf32>
    %54 = arith.mulf %49, %53 : vector<22x256xf32>
    %cst_16 = arith.constant dense<0.000000e+00> : vector<256xf32>
    %55 = vector.multi_reduction <add>, %54, %cst_16 [0] : vector<22x256xf32> to vector<256xf32>
    %56 = vector.shape_cast %55 : vector<256xf32> to vector<1x256xf32>
    %cst_17 = arith.constant dense<0.000000e+00> : vector<1xf32>
    %57 = vector.multi_reduction <add>, %56, %cst_17 [1] : vector<1x256xf32> to vector<1xf32>
    %58 = vector.shape_cast %57 : vector<1xf32> to vector<1x1xf32>
    %c0_i32 = arith.constant 0 : i32
    %59 = vector.broadcast %c0_i32 : i32 to vector<1x128xi32>
    %60 = arith.cmpi eq, %50, %59 : vector<1x128xi32>
    %cst_18 = arith.constant 0.000000e+00 : f32
    %61 = vector.shape_cast %58 : vector<1x1xf32> to vector<1x1xf32>
    %62 = vector.broadcast %61 : vector<1x1xf32> to vector<1x128xf32>
    %63 = vector.broadcast %cst_18 : f32 to vector<1x128xf32>
    %64 = arith.select %60, %62, %63 : vector<1x128xi1>, vector<1x128xf32>
    %65 = arith.addf %51, %64 : vector<1x128xf32>
    %c1 = arith.constant 1 : index
    %c0_19 = arith.constant 0 : index
    %c0_20 = arith.constant 0 : index
    %66 = vector.load %arg5[%c1, %c0_19, %c0_20] : memref<3x22x256xf32, #tpu.memory_space<vmem>>, vector<1x22x256xf32>
    %67 = vector.shape_cast %66 : vector<1x22x256xf32> to vector<22x256xf32>
    %68 = arith.mulf %49, %67 : vector<22x256xf32>
    %cst_21 = arith.constant dense<0.000000e+00> : vector<256xf32>
    %69 = vector.multi_reduction <add>, %68, %cst_21 [0] : vector<22x256xf32> to vector<256xf32>
    %70 = vector.shape_cast %69 : vector<256xf32> to vector<1x256xf32>
    %cst_22 = arith.constant dense<0.000000e+00> : vector<1xf32>
    %71 = vector.multi_reduction <add>, %70, %cst_22 [1] : vector<1x256xf32> to vector<1xf32>
    %72 = vector.shape_cast %71 : vector<1xf32> to vector<1x1xf32>
    %c1_i32 = arith.constant 1 : i32
    %73 = vector.broadcast %c1_i32 : i32 to vector<1x128xi32>
    %74 = arith.cmpi eq, %50, %73 : vector<1x128xi32>
    %cst_23 = arith.constant 0.000000e+00 : f32
    %75 = vector.shape_cast %72 : vector<1x1xf32> to vector<1x1xf32>
    %76 = vector.broadcast %75 : vector<1x1xf32> to vector<1x128xf32>
    %77 = vector.broadcast %cst_23 : f32 to vector<1x128xf32>
    %78 = arith.select %74, %76, %77 : vector<1x128xi1>, vector<1x128xf32>
    %79 = arith.addf %65, %78 : vector<1x128xf32>
    %c2 = arith.constant 2 : index
    %c0_24 = arith.constant 0 : index
    %c0_25 = arith.constant 0 : index
    %80 = vector.load %arg5[%c2, %c0_24, %c0_25] : memref<3x22x256xf32, #tpu.memory_space<vmem>>, vector<1x22x256xf32>
    %81 = vector.shape_cast %80 : vector<1x22x256xf32> to vector<22x256xf32>
    %82 = arith.mulf %49, %81 : vector<22x256xf32>
    %cst_26 = arith.constant dense<0.000000e+00> : vector<256xf32>
    %83 = vector.multi_reduction <add>, %82, %cst_26 [0] : vector<22x256xf32> to vector<256xf32>
    %84 = vector.shape_cast %83 : vector<256xf32> to vector<1x256xf32>
    %cst_27 = arith.constant dense<0.000000e+00> : vector<1xf32>
    %85 = vector.multi_reduction <add>, %84, %cst_27 [1] : vector<1x256xf32> to vector<1xf32>
    %86 = vector.shape_cast %85 : vector<1xf32> to vector<1x1xf32>
    %c2_i32 = arith.constant 2 : i32
    %87 = vector.broadcast %c2_i32 : i32 to vector<1x128xi32>
    %88 = arith.cmpi eq, %50, %87 : vector<1x128xi32>
    %cst_28 = arith.constant 0.000000e+00 : f32
    %89 = vector.shape_cast %86 : vector<1x1xf32> to vector<1x1xf32>
    %90 = vector.broadcast %89 : vector<1x1xf32> to vector<1x128xf32>
    %91 = vector.broadcast %cst_28 : f32 to vector<1x128xf32>
    %92 = arith.select %88, %90, %91 : vector<1x128xi1>, vector<1x128xf32>
    %93 = arith.addf %79, %92 : vector<1x128xf32>
    %94 = arith.negf %93 : vector<1x128xf32>
    %95 = math.exp %94 : vector<1x128xf32>
    %cst_29 = arith.constant 1.000000e+00 : f32
    %96 = vector.broadcast %cst_29 : f32 to vector<1x128xf32>
    %97 = arith.addf %96, %95 : vector<1x128xf32>
    %98 = arith.divf %96, %97 : vector<1x128xf32>
    %c0_30 = arith.constant 0 : index
    %c0_31 = arith.constant 0 : index
    %99 = vector.load %arg7[%c0_30, %c0_31] : memref<1x128xf32, #tpu.memory_space<vmem>>, vector<1x128xf32>
    tpu.vector_store %arg7[%c0_30, %c0_31], %98 {strides = array<i32>} : memref<1x128xf32, #tpu.memory_space<vmem>>, vector<1x128xf32>,
    return
  }
}

</mosaic_0001>

<bundles_post_ra>
// kernel: net_forward.1
= control target key start
LH: loop header
LB: loop body
LE: loop exit
PB: predicated region body
PF: predicated region fallthrough
CT: control target
= control target key end

     0   :  { %12 = vsyncpa [#allocation3], 0  ;;  %s1538_s0 = inlined_call_operand.vmem [shape: f32[30,1], index: 0, kind: input, shape index: {}]   ;;  %s1539_s1 = inlined_call_operand.vmem [shape: f32[5,128], index: 1, kind: input, shape index: {}]   ;;  %s1540_s2 = inlined_call_operand.vmem [shape: f32[1,128], index: 2, kind: input, shape index: {}]   ;;  %s1541_s3 = inlined_call_operand.hbm [shape: bf16[640,256], index: 3, kind: input, shape index: {}]   ;;  %s1542_s4 = inlined_call_operand.vmem [shape: f32[1,256], index: 4, kind: input, shape index: {}]   ;;  %s1543_s5 = inlined_call_operand.hbm [shape: f32[3,22,256], index: 5, kind: input, shape index: {}]   ;;  %s1544_s6 = inlined_call_operand.vmem [shape: f32[1,128], index: 6, kind: input, shape index: {}]   ;;  %s1545_s7 = inlined_call_operand.hbm [shape: f32[1,128], index: 7, kind: output, shape index: {}]  }
   0x1   :  { %13 = vsyncpa [#allocation6], 0 }
   0x2   :  { %14 = vsyncpa [#allocation4], 0  ;;  %s1369_s24 = smov [#allocation2]   ;;  %s1297_s28 = scalar_lea.hbm %s1541_s3, 10240 }
   0x3   :  { %s26_s25 = sshll.u32 %s1369_s24, 4  ;;  %p1298_p0 = scmp.ne.s32.totalorder %s1541_s3, %s1297_s28  ;;  %s27_s25 = int_to_ptr.vmem [resolvable:$true] %s26_s25 }
   0x4   :  { %p1301_p1 = scmp.lt.u32.totalorder %s1297_s28, %s1541_s3 }
   0x6   :  { %p1303_p2 = pnand %p1301_p1, %p1298_p0 }
   0x8   :  { %1306 = shalt.err (!%p1303_p2)
}
   0x9   :  { %s1307_s10 = scalar_lea.vmem %s27_s25, 10240  ;;  %p1312_p4 = scmp.lt.s32.totalorder %s27_s25, %s27_s25 }
   0xa   :  { %p1308_p3 = scmp.ne.s32.totalorder %s27_s25, %s1307_s10  ;;  %p1313_p5 = scmp.lt.s32.totalorder %s1307_s10, %s1307_s10 }
   0xc   :  { %p1314_p6 = por %p1313_p5, %p1312_p4 }
   0xe   :  { %p1315_p7 = pnand %p1314_p6, %p1308_p3 }
  0x10   :  { %1318 = shalt.err (!%p1315_p7)
}
  0x11   :  { %s1370_s11 = smov 128   ;;  %s1371_s12 = smov 8  }
  0x12   :  { %32 = dma.hbm_to_vmem [thread:$0]  %s1541_s3, 10240, %s27_s25, [#allocation3], %s1370_s11, %s1370_s11, %s1371_s12  }
  0x13   :  { %s1372_s15 = smov [#allocation5]   ;;  %s1319_s19 = scalar_lea.hbm %s1543_s5, 2304 }
  0x14   :  { %s40_s16 = sshll.u32 %s1372_s15, 4  ;;  %p1320_p8 = scmp.ne.s32.totalorder %s1543_s5, %s1319_s19  ;;  %s41_s16 = int_to_ptr.vmem [resolvable:$true] %s40_s16 }
  0x15   :  { %p1323_p9 = scmp.lt.u32.totalorder %s1319_s19, %s1543_s5 }
  0x17   :  { %p1325_p10 = pnand %p1323_p9, %p1320_p8 }
  0x19   :  { %1328 = shalt.err (!%p1325_p10)
}
  0x1a   :  { %s1329_s24 = scalar_lea.vmem %s41_s16, 2304  ;;  %p1334_p12 = scmp.lt.s32.totalorder %s41_s16, %s41_s16 }
  0x1b   :  { %p1330_p11 = scmp.ne.s32.totalorder %s41_s16, %s1329_s24  ;;  %p1335_p13 = scmp.lt.s32.totalorder %s1329_s24, %s1329_s24 }
  0x1d   :  { %p1336_p0 = por %p1335_p13, %p1334_p12 }
  0x1f   :  { %p1337_p1 = pnand %p1336_p0, %p1330_p11 }
  0x21   :  { %1340 = shalt.err (!%p1337_p1)
}
  0x22   :  { %s1373_s3 = smov 256   ;;  %s1374_s25 = smov 16  }
  0x23   :  { %46 = dma.hbm_to_vmem [thread:$0]  %s1543_s5, 2304, %s41_s16, [#allocation6], %s1373_s3, %s1373_s3, %s1374_s25  }
  0x24   :  { %1363 = dma.done.wait [#allocation3], 10240  }
  0x25   :  { %1364 = vsyncadd [#allocation3], 4294957056 }
  0x26   :  { %1365 = dma.done.wait [#allocation6], 2304  }
  0x27   :  { %1366 = vsyncadd [#allocation6], 4294964992  ;;  %v1375_v0 = vmov 0   ;;  %v58_v1 = vld [vmem:[%s1538_s0 + $0x10] sm:$0xff]  ;;  %v56_v2 = vld [vmem:[%s1538_s0] sm:$0xff]  ;;  %vm101_vm0 = vcmask 1046528  }
  0x28   :  { %1172 = vset.pattern.permute.xlu1 %v1375_v0  ;;  %1171 = vset.pattern.permute.xlu0 %v1375_v0  ;;  %v59_v3 = vld [vmem:[%s1538_s0 + $0x18] sm:$0x3f]  ;;  %v57_v4 = vld [vmem:[%s1538_s0 + $0x8] sm:$0xff]  ;;  %vm129_vm1 = vcmask 1045504   ;;  %vm157_vm2 = vcmask 1044480   ;;  %vm185_vm3 = vcmask 1043456  }
  0x29   :  { %73 = vperm.xlu1 %1172, %v58_v1   ;;  %63 = vperm.xlu0 %1171, %v56_v2   ;;  %v1173_v5 = vld [vmem:[#allocation2 + $0x4] ss:$8 sps:$4 sm:$0xff]   ;;  %v1177_v7 = vld [vmem:[#allocation2] ss:$8 sps:$4 sm:$0xff]   ;;  %v1179_v9 = vld [vmem:[#allocation2 + $0x14] ss:$8 sps:$4 sm:$0xff]  }
  0x2a   :  { %v1175_v6 = vld [vmem:[#allocation2 + $0x104] ss:$8 sps:$4 sm:$0xff]   ;;  %v1178_v8 = vld [vmem:[#allocation2 + $0x100] ss:$8 sps:$4 sm:$0xff]   ;;  %752 = vmatprep.subr.bf16.mxu1 %v1173_v5  ;;  %v1181_v10 = vld [vmem:[#allocation2 + $0x114] ss:$8 sps:$4 sm:$0xff]  }
  0x2b   :  { %803 = vmatprep.subr.bf16.mxu0 %v1175_v6  ;;  %753 = vmatpush1.bf16.msra.mxu1 %v1177_v7  ;;  %v1183_v11 = vld [vmem:[#allocation2 + $0x10] ss:$8 sps:$4 sm:$0xff]   ;;  %v1185_v13 = vld [vmem:[#allocation2 + $0x24] ss:$8 sps:$4 sm:$0xff]   ;;  %v1189_v15 = vld [vmem:[#allocation2 + $0x20] ss:$8 sps:$4 sm:$0xff]   ;;  %v81_v7 = vlaneseq }
  0x2c   :  { %v1184_v12 = vld [vmem:[#allocation2 + $0x110] ss:$8 sps:$4 sm:$0xff]   ;;  %804 = vmatpush1.bf16.msra.mxu0 %v1178_v8  ;;  %754 = vmatprep.subr.bf16.mxu1 %v1179_v9  ;;  %v1187_v14 = vld [vmem:[#allocation2 + $0x124] ss:$8 sps:$4 sm:$0xff]   ;;  %v1190_v16 = vld [vmem:[#allocation2 + $0x120] ss:$8 sps:$4 sm:$0xff]  }
  0x2d   :  { %78 = vperm.xlu1 %1172, %v59_v3   ;;  %68 = vperm.xlu0 %1171, %v57_v4   ;;  %v1191_v17 = vld [vmem:[#allocation2 + $0x34] ss:$8 sps:$4 sm:$0xff]   ;;  %v1195_v19 = vld [vmem:[#allocation2 + $0x30] ss:$8 sps:$4 sm:$0xff]   ;;  %v1197_v21 = vld [vmem:[#allocation2 + $0x44] ss:$8 sps:$4 sm:$0xff]  }
  0x2e   :  { %805 = vmatprep.subr.bf16.mxu0 %v1181_v10  ;;  %v1193_v18 = vld [vmem:[#allocation2 + $0x134] ss:$8 sps:$4 sm:$0xff]   ;;  %v1196_v20 = vld [vmem:[#allocation2 + $0x130] ss:$8 sps:$4 sm:$0xff]   ;;  %v1199_v22 = vld [vmem:[#allocation2 + $0x144] ss:$8 sps:$4 sm:$0xff]  }
  0x2f   :  { %755 = vmatpush1.bf16.msra.mxu1 %v1183_v11  ;;  %v1201_v23 = vld [vmem:[#allocation2 + $0x40] ss:$8 sps:$4 sm:$0xff]   ;;  %v1203_v25 = vld [vmem:[#allocation2 + $0x54] ss:$8 sps:$4 sm:$0xff]   ;;  %v1207_v27 = vld [vmem:[#allocation2 + $0x50] ss:$8 sps:$4 sm:$0xff]  }
  0x30   :  { %806 = vmatpush1.bf16.msra.mxu0 %v1184_v12  ;;  %756 = vmatprep.subr.bf16.mxu1 %v1185_v13  ;;  %v1202_v24 = vld [vmem:[#allocation2 + $0x140] ss:$8 sps:$4 sm:$0xff]   ;;  %v1205_v26 = vld [vmem:[#allocation2 + $0x154] ss:$8 sps:$4 sm:$0xff]   ;;  %v1208_v28 = vld [vmem:[#allocation2 + $0x150] ss:$8 sps:$4 sm:$0xff]  }
  0x31   :  { %807 = vmatprep.subr.bf16.mxu0 %v1187_v14  ;;  %v1209_v29 = vld [vmem:[#allocation2 + $0x64] ss:$8 sps:$4 sm:$0xff]   ;;  %v1213_v31 = vld [vmem:[#allocation2 + $0x60] ss:$8 sps:$4 sm:$0xff]   ;;  %v1215_v33 = vld [vmem:[#allocation2 + $0x74] ss:$8 sps:$4 sm:$0xff]  }
  0x32   :  { %v1211_v30 = vld [vmem:[#allocation2 + $0x164] ss:$8 sps:$4 sm:$0xff]   ;;  %v1214_v32 = vld [vmem:[#allocation2 + $0x160] ss:$8 sps:$4 sm:$0xff]   ;;  %v1217_v34 = vld [vmem:[#allocation2 + $0x174] ss:$8 sps:$4 sm:$0xff]  }
  0x33   :  { %757 = vmatpush1.bf16.msra.mxu1 %v1189_v15  ;;  %v1219_v35 = vld [vmem:[#allocation2 + $0x70] ss:$8 sps:$4 sm:$0xff]   ;;  %v1221_v37 = vld [vmem:[#allocation2 + $0x84] ss:$8 sps:$4 sm:$0xff]   ;;  %v1225_v39 = vld [vmem:[#allocation2 + $0x80] ss:$8 sps:$4 sm:$0xff]  }
  0x34   :  { %808 = vmatpush1.bf16.msra.mxu0 %v1190_v16  ;;  %758 = vmatprep.subr.bf16.mxu1 %v1191_v17  ;;  %v1220_v36 = vld [vmem:[#allocation2 + $0x170] ss:$8 sps:$4 sm:$0xff]   ;;  %v1223_v38 = vld [vmem:[#allocation2 + $0x184] ss:$8 sps:$4 sm:$0xff]   ;;  %v1226_v40 = vld [vmem:[#allocation2 + $0x180] ss:$8 sps:$4 sm:$0xff]  }
  0x35   :  { %809 = vmatprep.subr.bf16.mxu0 %v1193_v18  ;;  %v1227_v41 = vld [vmem:[#allocation2 + $0x94] ss:$8 sps:$4 sm:$0xff]   ;;  %v1231_v43 = vld [vmem:[#allocation2 + $0x90] ss:$8 sps:$4 sm:$0xff]   ;;  %v1233_v45 = vld [vmem:[#allocation2 + $0xa4] ss:$8 sps:$4 sm:$0xff]  }
  0x36   :  { %v1229_v42 = vld [vmem:[#allocation2 + $0x194] ss:$8 sps:$4 sm:$0xff]   ;;  %v1232_v44 = vld [vmem:[#allocation2 + $0x190] ss:$8 sps:$4 sm:$0xff]   ;;  %v1235_v46 = vld [vmem:[#allocation2 + $0x1a4] ss:$8 sps:$4 sm:$0xff]  }
  0x37   :  { %759 = vmatpush1.bf16.msra.mxu1 %v1195_v19  ;;  %v1237_v47 = vld [vmem:[#allocation2 + $0xa0] ss:$8 sps:$4 sm:$0xff]   ;;  %v1239_v49 = vld [vmem:[#allocation2 + $0xb4] ss:$8 sps:$4 sm:$0xff]   ;;  %v1243_v51 = vld [vmem:[#allocation2 + $0xb0] ss:$8 sps:$4 sm:$0xff]  }
  0x38   :  { %810 = vmatpush1.bf16.msra.mxu0 %v1196_v20  ;;  %760 = vmatprep.subr.bf16.mxu1 %v1197_v21  ;;  %v1238_v48 = vld [vmem:[#allocation2 + $0x1a0] ss:$8 sps:$4 sm:$0xff]   ;;  %v1241_v50 = vld [vmem:[#allocation2 + $0x1b4] ss:$8 sps:$4 sm:$0xff]   ;;  %v1244_v52 = vld [vmem:[#allocation2 + $0x1b0] ss:$8 sps:$4 sm:$0xff]  }
  0x39   :  { %811 = vmatprep.subr.bf16.mxu0 %v1199_v22  ;;  %v1245_v53 = vld [vmem:[#allocation2 + $0xc4] ss:$8 sps:$4 sm:$0xff]   ;;  %v1249_v55 = vld [vmem:[#allocation2 + $0xc0] ss:$8 sps:$4 sm:$0xff]   ;;  %v1251_v57 = vld [vmem:[#allocation2 + $0xd4] ss:$8 sps:$4 sm:$0xff]  }
  0x3a   :  { %v1247_v54 = vld [vmem:[#allocation2 + $0x1c4] ss:$8 sps:$4 sm:$0xff]   ;;  %v1250_v56 = vld [vmem:[#allocation2 + $0x1c0] ss:$8 sps:$4 sm:$0xff]   ;;  %v1253_v58 = vld [vmem:[#allocation2 + $0x1d4] ss:$8 sps:$4 sm:$0xff]  }
  0x3b   :  { %761 = vmatpush1.bf16.msra.mxu1 %v1201_v23  ;;  %v1255_v59 = vld [vmem:[#allocation2 + $0xd0] ss:$8 sps:$4 sm:$0xff]   ;;  %v1257_v61 = vld [vmem:[#allocation2 + $0xe4] ss:$8 sps:$4 sm:$0xff]   ;;  %v1261_v63 = vld [vmem:[#allocation2 + $0xe0] ss:$8 sps:$4 sm:$0xff]  }
  0x3c   :  { %812 = vmatpush1.bf16.msra.mxu0 %v1202_v24  ;;  %762 = vmatprep.subr.bf16.mxu1 %v1203_v25  ;;  %v1256_v60 = vld [vmem:[#allocation2 + $0x1d0] ss:$8 sps:$4 sm:$0xff]   ;;  %v1259_v62 = vld [vmem:[#allocation2 + $0x1e4] ss:$8 sps:$4 sm:$0xff]   ;;  %v1262_v1 = vld [vmem:[#allocation2 + $0x1e0] ss:$8 sps:$4 sm:$0xff]  }
  0x3d   :  { %813 = vmatprep.subr.bf16.mxu0 %v1205_v26  ;;  %v1263_v2 = vld [vmem:[#allocation2 + $0xf4] ss:$8 sps:$4 sm:$0xff]   ;;  %v1267_v4 = vld [vmem:[#allocation2 + $0xf0] ss:$8 sps:$4 sm:$0xff]   ;;  %v1271_v6 = vld [vmem:[#allocation2 + $0x204] ss:$8 sps:$4 sm:$0xff]  }
  0x3e   :  { %v1265_v3 = vld [vmem:[#allocation2 + $0x1f4] ss:$8 sps:$4 sm:$0xff]   ;;  %v1268_v5 = vld [vmem:[#allocation2 + $0x1f0] ss:$8 sps:$4 sm:$0xff]   ;;  %v1456_v8 = vshrl.u32 %v81_v7, 7  ;;  %s1376_s16 = smov [#allocation7]  }
  0x3f   :  { %763 = vmatpush1.bf16.msra.mxu1 %v1207_v27  ;;  %v60_v12 = vld [vmem:[%s1539_s1] sm:$0x1f]  ;;  %vm218_vm4 = vsmask.f32 7424  ;;  %vm244_vm5 = vsmask.f32 6400 }
  0x40   :  { %814 = vmatpush1.bf16.msra.mxu0 %v1208_v28  ;;  %764 = vmatprep.subr.bf16.mxu1 %v1209_v29  ;;  %v91_v9 = vsub.s32 1, %v1456_v8  ;;  %v119_v10 = vsub.s32 2, %v1456_v8  ;;  %v147_v11 = vsub.s32 3, %v1456_v8  ;;  %v175_v13 = vsub.s32 4, %v1456_v8  ;;  %s1037_s17 = sshll.u32 %s1376_s16, 4  ;;  %s1038_s17 = int_to_ptr.vmem [resolvable:$true] %s1037_s17 }
  0x41   :  { %815 = vmatprep.subr.bf16.mxu0 %v1211_v30  ;;  %v83_v14 = vsub.s32 0, %v1456_v8  ;;  %s1345_s18 = scalar_lea.vmem %s1038_s17, 32  ;;  %p1346_p3 = scmp.lt.s32.totalorder %s1038_s17, %s1038_s17 }
  0x42   :  { %v92_v15 = vrot.slane %v60_v12, %v91_v9  ;;  %v120_v16 = vrot.slane %v60_v12, %v119_v10  ;;  %v148_v17 = vrot.slane %v60_v12, %v147_v11  ;;  %v176_v18 = vrot.slane %v60_v12, %v175_v13  ;;  %v1047_v13 = vld [vmem:[%s1540_s2] ss:$0 sm:$0xff] }
  0x43   :  { %765 = vmatpush1.bf16.msra.mxu1 %v1213_v31  ;;  %v84_v19 = vrot.slane %v60_v12, %v83_v14 }
  0x44   :  { %816 = vmatpush1.bf16.msra.mxu0 %v1214_v32  ;;  %766 = vmatprep.subr.bf16.mxu1 %v1215_v33 }
  0x45   :  { %817 = vmatprep.subr.bf16.mxu0 %v1217_v34 }
  0x47   :  { %767 = vmatpush1.bf16.msra.mxu1 %v1219_v35 }
  0x48   :  { %818 = vmatpush1.bf16.msra.mxu0 %v1220_v36  ;;  %768 = vmatprep.subr.bf16.mxu1 %v1221_v37 }
  0x49   :  { %819 = vmatprep.subr.bf16.mxu0 %v1223_v38 }
  0x4b   :  { %769 = vmatpush1.bf16.msra.mxu1 %v1225_v39 }
  0x4c   :  { %820 = vmatpush1.bf16.msra.mxu0 %v1226_v40  ;;  %770 = vmatprep.subr.bf16.mxu1 %v1227_v41 }
  0x4d   :  { %821 = vmatprep.subr.bf16.mxu0 %v1229_v42 }
  0x4f   :  { %771 = vmatpush1.bf16.msra.mxu1 %v1231_v43 }
  0x50   :  { %822 = vmatpush1.bf16.msra.mxu0 %v1232_v44  ;;  %772 = vmatprep.subr.bf16.mxu1 %v1233_v45 }
  0x51   :  { %823 = vmatprep.subr.bf16.mxu0 %v1235_v46 }
  0x53   :  { %773 = vmatpush1.bf16.msra.mxu1 %v1237_v47 }
  0x54   :  { %824 = vmatpush1.bf16.msra.mxu0 %v1238_v48  ;;  %774 = vmatprep.subr.bf16.mxu1 %v1239_v49 }
  0x55   :  { %825 = vmatprep.subr.bf16.mxu0 %v1241_v50 }
  0x57   :  { %775 = vmatpush1.bf16.msra.mxu1 %v1243_v51 }
  0x58   :  { %826 = vmatpush1.bf16.msra.mxu0 %v1244_v52  ;;  %776 = vmatprep.subr.bf16.mxu1 %v1245_v53 }
  0x59   :  { %827 = vmatprep.subr.bf16.mxu0 %v1247_v54 }
  0x5b   :  { %777 = vmatpush1.bf16.msra.mxu1 %v1249_v55 }
  0x5c   :  { %828 = vmatpush1.bf16.msra.mxu0 %v1250_v56  ;;  %778 = vmatprep.subr.bf16.mxu1 %v1251_v57 }
  0x5d   :  { %829 = vmatprep.subr.bf16.mxu0 %v1253_v58 }
  0x5f   :  { %779 = vmatpush1.bf16.msra.mxu1 %v1255_v59 }
  0x60   :  { %830 = vmatpush1.bf16.msra.mxu0 %v1256_v60  ;;  %780 = vmatprep.subr.bf16.mxu1 %v1257_v61 }
  0x61   :  { %831 = vmatprep.subr.bf16.mxu0 %v1259_v62 }
  0x63   :  { %781 = vmatpush1.bf16.msra.mxu1 %v1261_v63 }
  0x64   :  { %832 = vmatpush1.bf16.msra.mxu0 %v1262_v1  ;;  %782 = vmatprep.subr.bf16.mxu1 %v1263_v2 }
  0x65   :  { %833 = vmatprep.subr.bf16.mxu0 %v1265_v3 }
  0x67   :  { %783 = vmatpush1.bf16.msra.mxu1 %v1267_v4 }
  0x68   :  { %834 = vmatpush1.bf16.msra.mxu0 %v1268_v5  ;;  %1129 = vmatprep.subr.bf16.mxu1 %v1271_v6 }
  0x69   :  { %854 = vmatprep.subr.bf16.mxu0 %v1271_v6 }
  0xa8   :  { %v74_v20 = vpop.permute.xlu1 %73  ;;  %v64_v21 = vpop.permute.xlu0 %63 }
  0xa9   :  { %v95_v22 = vmul.f32 %v92_v15, %v74_v20  ;;  %v123_v23 = vmul.f32 %v120_v16, %v74_v20  ;;  %v1470_v24 = vmul.f32 %v148_v17, %v74_v20  ;;  %v1472_v25 = vmul.f32 %v176_v18, %v74_v20 }
  0xaa   :  { %v93_v26 = vmul.f32 %v92_v15, %v64_v21  ;;  %v121_v27 = vmul.f32 %v120_v16, %v64_v21  ;;  %v87_v28 = vmul.f32 %v84_v19, %v74_v20  ;;  %v85_v30 = vmul.f32 %v84_v19, %v64_v21 }
  0xab   :  { %v105_v29 = vrot.slane %v95_v22, 1  ;;  %v133_v31 = vrot.slane %v123_v23, 2  ;;  %v161_v32 = vrot.slane %v1470_v24, 3  ;;  %v189_v33 = vrot.slane %v1472_v25, 4 }
  0xac   :  { %v149_v34 = vmul.f32 %v148_v17, %v64_v21  ;;  %v79_v35 = vpop.permute.xlu1 %78  ;;  %v69_v36 = vpop.permute.xlu0 %68  ;;  %v102_v37 = vrot.slane %v93_v26, 1  ;;  %v130_v38 = vrot.slane %v121_v27, 2  ;;  %v177_v41 = vmul.f32 %v176_v18, %v64_v21 }
  0xad   :  { %v96_v39 = vmul.f32 %v92_v15, %v79_v35  ;;  %v124_v40 = vmul.f32 %v120_v16, %v79_v35  ;;  %v88_v42 = vmul.f32 %v84_v19, %v79_v35  ;;  %v152_v43 = vmul.f32 %v148_v17, %v79_v35 }
  0xae   :  { %v180_v44 = vmul.f32 %v176_v18, %v79_v35  ;;  %v94_v47 = vmul.f32 %v92_v15, %v69_v36  ;;  %v122_v48 = vmul.f32 %v120_v16, %v69_v36  ;;  %v158_v49 = vrot.slane %v149_v34, 3 }
  0xaf   :  { %v107_v45 = vrot.slane %v96_v39, 1  ;;  %v135_v46 = vrot.slane %v124_v40, 2  ;;  %v163_v50 = vrot.slane %v152_v43, 3  ;;  %v86_v51 = vmul.f32 %v84_v19, %v69_v36 }
  0xb0   :  { %v150_v52 = vmul.f32 %v148_v17, %v69_v36  ;;  %v191_v55 = vrot.slane %v180_v44, 4  ;;  %v103_v56 = vrot.slane %v94_v47, 1  ;;  %v131_v59 = vrot.slane %v122_v48, 2 }
  0xb1   :  { %v108_v53 = vsel %vm101_vm0, %v105_v29, %v107_v45  ;;  %v116_v54 = vadd.f32 %v107_v45, %v88_v42  ;;  %v136_v58 = vsel %vm129_vm1, %v133_v31, %v135_v46  ;;  %v178_v60 = vmul.f32 %v176_v18, %v69_v36 }
  0xb2   :  { %v115_v57 = vadd.f32 %v108_v53, %v87_v28  ;;  %v104_v62 = vsel %vm101_vm0, %v102_v37, %v103_v56  ;;  %v106_v63 = vsel %vm101_vm0, %v103_v56, %v105_v29  ;;  %v159_v1 = vrot.slane %v150_v52, 3 }
  0xb3   :  { %v144_v61 = vadd.f32 %v135_v46, %v116_v54  ;;  %v186_v2 = vrot.slane %v177_v41, 4  ;;  %v113_v4 = vadd.f32 %v104_v62, %v85_v30  ;;  %v114_v5 = vadd.f32 %v106_v63, %v86_v51  ;;  %v1277_v62 = vld [vmem:[#allocation2 + $0x224] ss:$8 sps:$4 sm:$0xff]   ;;  %v1275_v63 = vld [vmem:[#allocation2 + $0x220] ss:$8 sps:$4 sm:$0xff]  }
  0xb4   :  { %v143_v3 = vadd.f32 %v136_v58, %v115_v57  ;;  %v164_v6 = vsel %vm157_vm2, %v161_v32, %v163_v50  ;;  %v132_v11 = vsel %vm129_vm1, %v130_v38, %v131_v59  ;;  %v134_v12 = vsel %vm129_vm1, %v131_v59, %v133_v31  ;;  %v1274_v59 = vld [vmem:[#allocation2 + $0x214] ss:$8 sps:$4 sm:$0xff]  }
  0xb5   :  { %v172_v10 = vadd.f32 %v163_v50, %v144_v61  ;;  %v141_v16 = vadd.f32 %v132_v11, %v113_v4  ;;  %v142_v17 = vadd.f32 %v134_v12, %v114_v5  ;;  %v187_v18 = vrot.slane %v178_v60, 4  ;;  %v1272_v61 = vld [vmem:[#allocation2 + $0x210] ss:$8 sps:$4 sm:$0xff]   ;;  %v1281_v4 = vld [vmem:[#allocation2 + $0x240] ss:$8 sps:$4 sm:$0xff]  }
  0xb6   :  { %v171_v15 = vadd.f32 %v164_v6, %v143_v3  ;;  %v192_v19 = vsel %vm185_vm3, %v189_v33, %v191_v55  ;;  %v160_v21 = vsel %vm157_vm2, %v158_v49, %v159_v1  ;;  %v162_v22 = vsel %vm157_vm2, %v159_v1, %v161_v32  ;;  %v1280_v1 = vld [vmem:[#allocation2 + $0x234] ss:$8 sps:$4 sm:$0xff]   ;;  %v1283_v3 = vld [vmem:[#allocation2 + $0x244] ss:$8 sps:$4 sm:$0xff]   ;;  %v1284_v6 = vld [vmem:[#allocation2 + $0x250] ss:$8 sps:$4 sm:$0xff]  }
  0xb7   :  { %v200_v20 = vadd.f32 %v191_v55, %v172_v10  ;;  %v169_v24 = vadd.f32 %v160_v21, %v141_v16  ;;  %v170_v25 = vadd.f32 %v162_v22, %v142_v17  ;;  %v188_v27 = vsel %vm185_vm3, %v186_v2, %v187_v18  ;;  %v1269_v55 = vld [vmem:[#allocation2 + $0x200] ss:$8 sps:$4 sm:$0xff]   ;;  %v1278_v2 = vld [vmem:[#allocation2 + $0x230] ss:$8 sps:$4 sm:$0xff]   ;;  %v1286_v5 = vld [vmem:[#allocation2 + $0x254] ss:$8 sps:$4 sm:$0xff]  }
  0xb8   :  { %v199_v23 = vadd.f32 %v192_v19, %v171_v15  ;;  %v190_v28 = vsel %vm185_vm3, %v187_v18, %v189_v33  ;;  %v1289_v10 = vld [vmem:[#allocation2 + $0x264] ss:$8 sps:$4 sm:$0xff]   ;;  %v1287_v11 = vld [vmem:[#allocation2 + $0x260] ss:$8 sps:$4 sm:$0xff]   ;;  %v1292_v12 = vld [vmem:[#allocation2 + $0x274] ss:$8 sps:$4 sm:$0xff]  }
  0xb9   :  { %v211_v26 = vadd.f32 %v1047_v13, %v200_v20  ;;  %v197_v30 = vadd.f32 %v188_v27, %v169_v24  ;;  %v198_v31 = vadd.f32 %v190_v28, %v170_v25  ;;  %v340_v17 = vld [vmem:[%s1542_s4] sm:$0x3] }
  0xba   :  { %v210_v29 = vadd.f32 %v1047_v13, %v199_v23  ;;  %v345_v18 = vrot.slane %v340_v17, %v83_v14  ;;  %v349_v25 = vrot.slane %v340_v17, %v91_v9 }
  0xbb   :  { %v215_v34 = vmax.f32 %v211_v26, 0.0  ;;  %v208_v36 = vadd.f32 %v1047_v13, %v197_v30  ;;  %v209_v37 = vadd.f32 %v1047_v13, %v198_v31 }
  0xbc   :  { %v214_v35 = vmax.f32 %v210_v29, 0.0 }
  0xbd   :  { %v212_v39 = vmax.f32 %v208_v36, 0.0  ;;  %v213_v40 = vmax.f32 %v209_v37, 0.0 }
  0xbe   :  { %v1491_v38 = vpack.c.bf16 %v215_v34, %v214_v35 }
  0xbf   :  { %v1493_v32 = vpack.c.bf16 %v213_v40, %v212_v39 }
  0xc0   :  { %v227_v41 = vshll.u32 %v1491_v38, 16  ;;  %v231_v42 = vshrl.u32 %v1491_v38, 16  ;;  %v240_v51 = vrot.slane %v1491_v38, 1  ;;  %v256_v15 = vrot.slane %v1491_v38, 2 }
  0xc1   :  { %v220_v43 = vshrl.u32 %v1493_v32, 16  ;;  %v222_v33 = vshll.u32 %v1493_v32, 16  ;;  %v239_v50 = vrot.slane %v1493_v32, 1  ;;  %v255_v13 = vrot.slane %v1493_v32, 2 }
  0xc2   :  { %v248_v44 = vrot.slane %v231_v42, 1  ;;  %v249_v45 = vrot.slane %v227_v41, 2  ;;  %v229_v53 = vrot.slane %v227_v41, 1 }
  0xc3   :  { %v224_v46 = vrot.slane %v222_v33, 1  ;;  %v245_v47 = vrot.slane %v220_v43, 1  ;;  %v246_v48 = vrot.slane %v222_v33, 2  ;;  %v241_v58 = vsel %vm101_vm0, %v239_v50, %v240_v51  ;;  %v914_v33 = vld [vmem:[#allocation5] sm:$0xff] }
  0xc4   :  { %v250_v49 = vor.u32 %v249_v45, %v248_v44  ;;  %v233_v60 = vor.u32 %v231_v42, %v229_v53  ;;  %v257_v16 = vsel %vm129_vm1, %v255_v13, %v256_v15  ;;  %v951_v44 = vld [vmem:[#allocation5 + $0x30] sm:$0xff]  ;;  %v918_v45 = vld [vmem:[#allocation5 + $0x20] sm:$0x3f] }
  0xc5   :  { %v225_v52 = vor.u32 %v224_v46, %v220_v43  ;;  %v247_v54 = vor.u32 %v246_v48, %v245_v47  ;;  %v916_v13 = vld [vmem:[#allocation5 + $0x10] sm:$0xff] }
  0xc7   :  { %v230_v56 = vsel %vm218_vm4, %v225_v52, %v229_v53  ;;  %v251_v57 = vsel %vm244_vm5, %v247_v54, %v250_v49  ;;  %v955_v52 = vld [vmem:[#allocation5 + $0x50] sm:$0x3f] }
  0xc8   :  { %784 = vmatprep.mubr.bf16.mxu1 %v230_v56  ;;  %835 = vmatprep.mubr.bf16.mxu0 %v251_v57  ;;  %v988_v56 = vld [vmem:[#allocation5 + $0x60] sm:$0xff] }
  0xc9   :  { %785 = vmatmul.mubr.bf16.vlgmr.msra.gmra.mrb[0].mxu1 %v1493_v32  ;;  %836 = vmatmul.mubr.bf16.vlgmr.msra.gmra.mrb[0].mxu0 %v241_v58  ;;  %v992_v57 = vld [vmem:[#allocation5 + $0x80] sm:$0x3f] }
  0xca   :  { %855 = vmatpush1.bf16.msra.mxu0 %v1269_v55  ;;  %1137 = vmatpush1.bf16.msra.mxu1 %v1269_v55 }
  0xcb   :  { %794 = vmatprep.mubr.bf16.mxu1 %v233_v60  ;;  %845 = vmatprep.mubr.bf16.mxu0 %v250_v49 }
  0xcc   :  { %856 = vmatprep.subr.bf16.mxu0 %v1274_v59  ;;  %1130 = vmatprep.subr.bf16.mxu1 %v1274_v59  ;;  %v915_v59 = vld [vmem:[#allocation5 + $0x8] sm:$0xff] }
  0xce   :  { %857 = vmatpush1.bf16.msra.mxu0 %v1272_v61  ;;  %1138 = vmatpush1.bf16.msra.mxu1 %v1272_v61 }
  0xcf   :  { %858 = vmatprep.subr.bf16.mxu0 %v1277_v62  ;;  %1131 = vmatprep.subr.bf16.mxu1 %v1277_v62 }
  0xd1   :  { %795 = vmatmul.mubr.bf16.gmra.mrb[4].mxu1 %v1491_v38  ;;  %846 = vmatmul.mubr.bf16.gmra.mrb[4].mxu0 %v240_v51 }
  0xd2   :  { %859 = vmatpush1.bf16.msra.mxu0 %v1275_v63  ;;  %1139 = vmatpush1.bf16.msra.mxu1 %v1275_v63  ;;  %v952_v63 = vld [vmem:[#allocation5 + $0x38] sm:$0xff] }
  0xd3   :  { %860 = vmatprep.subr.bf16.mxu0 %v1280_v1  ;;  %1132 = vmatprep.subr.bf16.mxu1 %v1280_v1  ;;  %v919_v1 = vld [vmem:[#allocation5 + $0x28] sm:$0x3f] }
  0xd4   :  { %886 = vmatprep.mubr.bf16.mxu0 %v1375_v0  ;;  %896 = vmatprep.mubr.bf16.mxu1 %v1375_v0  ;;  %v1290_v0 = vld [vmem:[#allocation2 + $0x270] ss:$8 sps:$4 sm:$0xff]  }
  0xd6   :  { %861 = vmatpush1.bf16.msra.mxu0 %v1278_v2  ;;  %1140 = vmatpush1.bf16.msra.mxu1 %v1278_v2 }
  0xd7   :  { %862 = vmatprep.subr.bf16.mxu0 %v1283_v3  ;;  %1133 = vmatprep.subr.bf16.mxu1 %v1283_v3 }
  0xda   :  { %863 = vmatpush1.bf16.msra.mxu0 %v1281_v4  ;;  %1141 = vmatpush1.bf16.msra.mxu1 %v1281_v4  ;;  %v989_v4 = vld [vmem:[#allocation5 + $0x68] sm:$0xff] }
  0xdb   :  { %864 = vmatprep.subr.bf16.mxu0 %v1286_v5  ;;  %1134 = vmatprep.subr.bf16.mxu1 %v1286_v5  ;;  %v956_v5 = vld [vmem:[#allocation5 + $0x58] sm:$0x3f] }
  0xde   :  { %865 = vmatpush1.bf16.msra.mxu0 %v1284_v6  ;;  %1142 = vmatpush1.bf16.msra.mxu1 %v1284_v6  ;;  %v993_v6 = vld [vmem:[#allocation5 + $0x88] sm:$0x3f] }
  0xdf   :  { %866 = vmatprep.subr.bf16.mxu0 %v1289_v10  ;;  %1135 = vmatprep.subr.bf16.mxu1 %v1289_v10 }
  0xe2   :  { %867 = vmatpush1.bf16.msra.mxu0 %v1287_v11  ;;  %1143 = vmatpush1.bf16.msra.mxu1 %v1287_v11 }
  0xe3   :  { %868 = vmatprep.subr.bf16.mxu0 %v1292_v12  ;;  %1136 = vmatprep.subr.bf16.mxu1 %v1292_v12 }
  0xe6   :  { %869 = vmatpush1.bf16.msra.mxu0 %v1290_v0  ;;  %1144 = vmatpush1.bf16.msra.mxu1 %v1290_v0 }
  0xe9   :  { %887 = vmatmul.mubr.bf16.vlgmr.msra.gmra.mrb[0].mxu0 %v257_v16  ;;  %897 = vmatmul.mubr.bf16.vlgmr.msra.gmra.mrb[8].mxu1 %v256_v15  ;;  %v953_v15 = vld [vmem:[#allocation5 + $0x40] sm:$0xff]  ;;  %v990_v16 = vld [vmem:[#allocation5 + $0x70] sm:$0xff] }
 0x19c   :  { %v786_v19 = vpop.f32.mrb[0].mxu1 }
 0x19d   :  { %v787_v20 = vadd.f32 %v786_v19, %v345_v18  ;;  %v788_v21 = vpop.f32.mrb[1].mxu1 }
 0x19e   :  { %v790_v22 = vpop.f32.mrb[2].mxu1  ;;  %v789_v39 = vadd.f32 %v788_v21, %v349_v25  ;;  %v917_v21 = vld [vmem:[#allocation5 + $0x18] sm:$0xff] }
 0x19f   :  { %v791_v23 = vadd.f32 %v790_v22, %v345_v18  ;;  %v792_v24 = vpop.f32.mrb[3].mxu1  ;;  %v954_v22 = vld [vmem:[#allocation5 + $0x48] sm:$0xff] }
 0x1a0   :  { %v793_v9 = vadd.f32 %v792_v24, %v349_v25 }
 0x1a4   :  { %v796_v26 = vpop.f32.mrb[4].mxu1  ;;  %v847_v27 = vpop.f32.mrb[4].mxu0 }
 0x1a5   :  { %v797_v28 = vadd.f32 %v796_v26, %v345_v18  ;;  %v798_v29 = vpop.f32.mrb[5].mxu1  ;;  %v849_v30 = vpop.f32.mrb[5].mxu0 }
 0x1a6   :  { %v799_v31 = vadd.f32 %v798_v29, %v349_v25  ;;  %v800_v34 = vpop.f32.mrb[6].mxu1  ;;  %v851_v35 = vpop.f32.mrb[6].mxu0 }
 0x1a7   :  { %v848_v36 = vadd.f32 %v847_v27, %v797_v28  ;;  %v801_v37 = vpop.f32.mrb[7].mxu1  ;;  %v852_v14 = vpop.f32.mrb[7].mxu0 }
 0x1a8   :  { %v850_v38 = vadd.f32 %v849_v30, %v799_v31 }
 0x1bc   :  { %v888_v40 = vpop.f32.mrb[0].mxu0  ;;  %v898_v32 = vpop.f32.mrb[8].mxu1 }
 0x1bd   :  { %v1146_v41 = vadd.f32 %v888_v40, %v787_v20  ;;  %v899_v42 = vadd.f32 %v898_v32, %v848_v36  ;;  %v890_v43 = vpop.f32.mrb[1].mxu0  ;;  %v900_v8 = vpop.f32.mrb[9].mxu1 }
 0x1be   :  { %v1148_v46 = vadd.f32 %v890_v43, %v789_v39  ;;  %v901_v47 = vadd.f32 %v900_v8, %v850_v38  ;;  %v892_v48 = vpop.f32.mrb[2].mxu0  ;;  %v902_v49 = vpop.f32.mrb[10].mxu1 }
 0x1bf   :  { %v905_v50 = vmax.f32 %v1146_v41, 0.0  ;;  %v909_v51 = vmax.f32 %v899_v42, 0.0  ;;  %v1150_v53 = vadd.f32 %v892_v48, %v791_v23  ;;  %v894_v54 = vpop.f32.mrb[3].mxu0  ;;  %v903_v55 = vpop.f32.mrb[11].mxu1  ;;  %v991_v23 = vld [vmem:[#allocation5 + $0x78] sm:$0xff] }
 0x1c0   :  { %v906_v58 = vmax.f32 %v1148_v46, 0.0  ;;  %v910_v60 = vmax.f32 %v901_v47, 0.0  ;;  %v1152_v61 = vadd.f32 %v894_v54, %v793_v9 }
 0x1c1   :  { %v924_v62 = vmul.f32 %v918_v45, %v909_v51  ;;  %v920_v2 = vmul.f32 %v914_v33, %v905_v50  ;;  %v961_v3 = vmul.f32 %v955_v52, %v909_v51  ;;  %v957_v10 = vmul.f32 %v951_v44, %v905_v50 }
 0x1c2   :  { %v994_v11 = vmul.f32 %v988_v56, %v905_v50  ;;  %v998_v12 = vmul.f32 %v992_v57, %v909_v51  ;;  %v921_v0 = vmul.f32 %v915_v59, %v906_v58  ;;  %v958_v18 = vmul.f32 %v952_v63, %v906_v58 }
 0x1c3   :  { %v927_v17 = vsel %vm129_vm1, %v924_v62, 0.0  ;;  %v925_v19 = vmul.f32 %v919_v1, %v910_v60  ;;  %v907_v20 = vmax.f32 %v1150_v53, 0.0  ;;  %v964_v24 = vsel %vm129_vm1, %v961_v3, 0.0 }
 0x1c4   :  { %v995_v25 = vmul.f32 %v989_v4, %v906_v58  ;;  %v962_v26 = vmul.f32 %v956_v5, %v910_v60  ;;  %v908_v27 = vmax.f32 %v1152_v61, 0.0  ;;  %v999_v28 = vmul.f32 %v993_v6, %v910_v60 }
 0x1c5   :  { %v922_v29 = vmul.f32 %v916_v13, %v907_v20  ;;  %v959_v30 = vmul.f32 %v953_v15, %v907_v20  ;;  %v996_v31 = vmul.f32 %v990_v16, %v907_v20  ;;  %v1001_v34 = vsel %vm129_vm1, %v998_v12, 0.0 }
 0x1c6   :  { %v923_v35 = vmul.f32 %v917_v21, %v908_v27  ;;  %v960_v36 = vmul.f32 %v954_v22, %v908_v27  ;;  %v997_v37 = vmul.f32 %v991_v23, %v908_v27  ;;  %v936_v14 = vsel %vm129_vm1, %v925_v19, 0.0 }
 0x1c7   :  { %v926_v38 = vadd.f32 %v922_v29, %v920_v2  ;;  %v963_v39 = vadd.f32 %v959_v30, %v957_v10  ;;  %v1000_v40 = vadd.f32 %v996_v31, %v994_v11  ;;  %v973_v32 = vsel %vm129_vm1, %v962_v26, 0.0 }
 0x1c8   :  { %v935_v41 = vadd.f32 %v923_v35, %v921_v0  ;;  %v972_v42 = vadd.f32 %v960_v36, %v958_v18  ;;  %v1009_v43 = vadd.f32 %v997_v37, %v995_v25  ;;  %v1010_v8 = vsel %vm129_vm1, %v999_v28, 0.0  ;;  %v913_v28 = vld [vmem:[%s1544_s6] sm:$0x1]  ;;  %s1341_s6 = scalar_lea.vmem %s1038_s17, 16 }
 0x1c9   :  { %v965_v9 = vadd.f32 %v964_v24, %v963_v39  ;;  %v928_v33 = vadd.f32 %v927_v17, %v926_v38  ;;  %v1002_v44 = vadd.f32 %v1001_v34, %v1000_v40  ;;  %v912_v27 = vand.u32 127, %v81_v7  ;;  %p1342_p2 = scmp.ne.s32.totalorder %s1038_s17, %s1341_s6  ;;  %p1347_p4 = scmp.lt.s32.totalorder %s1345_s18, %s1341_s6 }
 0x1ca   :  { %v974_v45 = vadd.f32 %v973_v32, %v972_v42  ;;  %v937_v46 = vadd.f32 %v936_v14, %v935_v41  ;;  %v1011_v47 = vadd.f32 %v1010_v8, %v1009_v43 }
 0x1cb   :  { %v966_v48 = vrot.slane %v965_v9, 4  ;;  %v929_v49 = vrot.slane %v928_v33, 4  ;;  %v1003_v50 = vrot.slane %v1002_v44, 4  ;;  %vm947_vm6 = vcmp.eq.s32.totalorder %v912_v27, 0  ;;  %p1348_p5 = por %p1347_p4, %p1346_p3 }
 0x1cc   :  { %v975_v51 = vrot.slane %v974_v45, 4  ;;  %v938_v52 = vrot.slane %v937_v46, 4  ;;  %v1012_v53 = vrot.slane %v1011_v47, 4  ;;  %vm984_vm7 = vcmp.eq.s32.totalorder %v912_v27, 1 }
 0x1cd   :  { %v967_v54 = vadd.f32 %v966_v48, %v965_v9  ;;  %v930_v55 = vadd.f32 %v929_v49, %v928_v33  ;;  %v1004_v56 = vadd.f32 %v1003_v50, %v1002_v44  ;;  %vm1021_vm8 = vcmp.eq.s32.totalorder %v912_v27, 2  ;;  %p1349_p6 = pnand %p1348_p5, %p1342_p2 }
 0x1ce   :  { %v976_v57 = vadd.f32 %v975_v51, %v974_v45  ;;  %v939_v58 = vadd.f32 %v938_v52, %v937_v46  ;;  %v1013_v59 = vadd.f32 %v1012_v53, %v1011_v47 }
 0x1cf   :  { %v968_v60 = vrot.slane %v967_v54, 2  ;;  %v931_v61 = vrot.slane %v930_v55, 2  ;;  %v1005_v62 = vrot.slane %v1004_v56, 2 }
 0x1d0   :  { %v977_v63 = vrot.slane %v976_v57, 2  ;;  %v940_v1 = vrot.slane %v939_v58, 2  ;;  %v1014_v2 = vrot.slane %v1013_v59, 2 }
 0x1d1   :  { %v969_v3 = vadd.f32 %v968_v60, %v967_v54  ;;  %v932_v4 = vadd.f32 %v931_v61, %v930_v55  ;;  %v1006_v5 = vadd.f32 %v1005_v62, %v1004_v56 }
 0x1d2   :  { %v978_v6 = vadd.f32 %v977_v63, %v976_v57  ;;  %v941_v10 = vadd.f32 %v940_v1, %v939_v58  ;;  %v1015_v11 = vadd.f32 %v1014_v2, %v1013_v59 }
 0x1d3   :  { %v970_v12 = vrot.slane %v969_v3, 1  ;;  %v933_v0 = vrot.slane %v932_v4, 1  ;;  %v1007_v13 = vrot.slane %v1006_v5, 1 }
 0x1d4   :  { %v979_v15 = vrot.slane %v978_v6, 1  ;;  %v942_v16 = vrot.slane %v941_v10, 1  ;;  %v1016_v17 = vrot.slane %v1015_v11, 1 }
 0x1d5   :  { %v971_v18 = vadd.f32 %v970_v12, %v969_v3  ;;  %v934_v19 = vadd.f32 %v933_v0, %v932_v4  ;;  %v1008_v20 = vadd.f32 %v1007_v13, %v1006_v5 }
 0x1d6   :  { %v980_v21 = vadd.f32 %v979_v15, %v978_v6  ;;  %v943_v22 = vadd.f32 %v942_v16, %v941_v10  ;;  %v1017_v23 = vadd.f32 %v1016_v17, %v1015_v11 }
 0x1d8   :  { %v981_v24 = vadd.f32 %v980_v21, %v971_v18  ;;  %v944_v25 = vadd.f32 %v943_v22, %v934_v19  ;;  %v1018_v26 = vadd.f32 %v1017_v23, %v1008_v20 }
 0x1da   :  { %982 = vadd.xlane.f32.xlu1 %v981_v24  ;;  %945 = vadd.xlane.f32.xlu0 %v944_v25 }
 0x1de   :  { %1019 = vadd.xlane.f32.xlu0 %v1018_v26 }
 0x267   :  { %v983_v29 = vpop.xlane.xlu1 %982  ;;  %v946_v30 = vpop.xlane.xlu0 %945 }
 0x268   :  { %v948_v31 = vsel %vm947_vm6, %v946_v30, 0.0  ;;  %v985_v35 = vsel %vm984_vm7, %v983_v29, 0.0 }
 0x269   :  { %v949_v34 = vadd.f32 %v948_v31, %v913_v28 }
 0x26b   :  { %v986_v36 = vadd.f32 %v985_v35, %v949_v34  ;;  %v1020_v37 = vpop.xlane.xlu0 %1019 }
 0x26c   :  { %v1022_v14 = vsel %vm1021_vm8, %v1020_v37, 0.0 }
 0x26d   :  { %v1023_v38 = vadd.f32 %v1022_v14, %v986_v36 }
 0x26f   :  { %v1128_v39 = vmul.f32 -1.442695, %v1023_v38 }
 0x271   :  { %1293 = vpow2.f32 %v1128_v39 }
 0x27b   :  { %v1294_v40 = vpop.eup %1293 }
 0x27c   :  { %v1027_v7 = vadd.f32 1.0, %v1294_v40 }
 0x27e   :  { %1295 = vrcp.f32 %v1027_v7 }
 0x288   :  { %v1296_v32 = vpop.eup %1295 }
 0x289   :  { %1030 = vst [vmem:[#allocation7] sm:$0x1] %v1296_v32 }
 0x28a   :  { %1352 = shalt.err (!%p1349_p6)
}
 0x28b   :  { %s1353_s21 = scalar_lea.hbm %s1545_s7, 16 }
 0x28c   :  { %p1354_p7 = scmp.ne.s32.totalorder %s1545_s7, %s1353_s21  ;;  %p1357_p8 = scmp.lt.u32.totalorder %s1353_s21, %s1545_s7 }
 0x28e   :  { %p1359_p9 = pnand %p1357_p8, %p1354_p7 }
 0x290   :  { %1362 = shalt.err (!%p1359_p9)
}
 0x291   :  { %1040 = dma.vmem_to_hbm [thread:$0]  %s1038_s17, 16, %s1545_s7, [#allocation4]  }
 0x292   :  { %1367 = dma.done.wait [#allocation4], 16  }
 0x293   :  { %1368 = vsyncadd [#allocation4], 4294967280 }
 0x294   :  { %1044 = vsyncpa [#allocation3], 1 }
 0x295   :  { %1045 = vsyncpa [#allocation6], 1 }
 0x296   :  { %1046 = vsyncpa [#allocation4], 1 }

</bundles_post_ra>
